<compile_context>
chip_gen: v7x
topology: tpu7x:2x2x1
jax: 0.10.0
libtpu: 0.0.40
codegen_flags: <defaults>
</compile_context>

<pallas_src>
import jax
import jax.numpy as jnp
from jax.experimental import pallas as pl
from jax.experimental.pallas import tpu as pltpu


def nibm1_kernel(x_ref, palign_ref, w1_ref, b1_ref, w2_ref, b2_ref, out_ref):
    """One grid step = one block of Bblk batch elements.

    x_ref:      (Bblk, Tx, Dx) f32
    palign_ref: (Bblk, Tx)     f32   -- seq_mask_x / seq_len_x (fused in wrapper)
    w1_ref:     (Dx, H)  bf16,  b1_ref: (1, H)  f32
    w2_ref:     (H, V)   bf16,  b2_ref: (1, V)  f32
    out_ref:    (Bblk, 1, V)   f32   -- marginal p(y|x); broadcast to Ty outside
    """
    bblk, tx, dx = x_ref.shape
    rows = bblk * tx
    v = w2_ref.shape[1]

    # ---- translation_layer: Linear -> ReLU -> Linear (row-batched GEMMs) ----
    x2 = x_ref[...].reshape(rows, dx)
    h = jnp.dot(x2.astype(jnp.bfloat16), w1_ref[...],
                preferred_element_type=jnp.float32)
    h = jnp.maximum(h + b1_ref[...], 0.0)                           # [rows, H]
    logits = jnp.dot(h.astype(jnp.bfloat16), w2_ref[...],
                     preferred_element_type=jnp.float32)
    logits = logits + b2_ref[...]                                   # [rows, V]

    # ---- softmax normalization folded into p_align --------------------------
    l3 = logits.reshape(bblk, tx, v)
    m = jnp.max(l3, axis=-1, keepdims=True)                         # [Bblk, Tx, 1]
    e3 = jnp.exp(l3 - m)                                            # [Bblk, Tx, V] (unnormalized)
    denom = jnp.sum(e3, axis=-1)                                    # [Bblk, Tx]
    r = palign_ref[...] * pl.reciprocal(denom, approx=False)        # [Bblk, Tx]

    # marginal[b, v] = sum_x r[b, x] * e3[b, x, v]   (batched [1,Tx] @ [Tx,V])
    marg = jnp.einsum('bqx,bxv->bqv', r.reshape(bblk, 1, tx), e3,
                      preferred_element_type=jnp.float32)           # [Bblk, 1, V]
    out_ref[...] = marg.astype(out_ref.dtype)


def neural_ibm1_forward(x, seq_mask_x, seq_len_x, longest_y, params, *,
                        block_b=None):
    """x: [B, Tx, Dx] f32; seq_mask_x: [B, Tx]; seq_len_x: [B]; -> [B, Ty, V]."""
    w1, b1, w2, b2 = params
    B, Tx, Dx = x.shape
    H = w1.shape[1]
    V = w2.shape[1]
    Ty = int(longest_y)

    # Fuse mask & length into a single alignment-probability input.
    p_align = seq_mask_x.astype(x.dtype) / seq_len_x.astype(x.dtype)[:, None]  # [B, Tx]

    # Pick a batch block so each grid step feeds ~128-256 rows to the MXU.
    if block_b is None:
        block_b = max(1, 256 // max(Tx, 1))
    if block_b >= B:
        block_b = B                              # single step, block == full batch
    else:
        block_b = max(8, (block_b // 8) * 8)     # keep the sublane dim aligned

    nb = pl.cdiv(B, block_b)
    Bp = nb * block_b
    if Bp != B:                                  # pad batch; padded rows have p_align == 0
        x = jnp.pad(x, ((0, Bp - B), (0, 0), (0, 0)))
        p_align = jnp.pad(p_align, ((0, Bp - B), (0, 0)))

    # MXU-native operand dtype: cast the (grid-invariant) weights once, outside
    # the kernel.  Biases + accumulation stay in f32.
    w1b = w1.astype(jnp.bfloat16)
    w2b = w2.astype(jnp.bfloat16)
    b1r = b1.reshape(1, H)
    b2r = b2.reshape(1, V)

    grid_spec = pltpu.PrefetchScalarGridSpec(
        num_scalar_prefetch=0,
        grid=(nb,),
        in_specs=[
            pl.BlockSpec((block_b, Tx, Dx), lambda i: (i, 0, 0)),   # x
            pl.BlockSpec((block_b, Tx), lambda i: (i, 0)),          # p_align
            pl.BlockSpec((Dx, H), lambda i: (0, 0)),                # W1 (bf16)
            pl.BlockSpec((1, H), lambda i: (0, 0)),                 # b1
            pl.BlockSpec((H, V), lambda i: (0, 0)),                 # W2 (bf16)
            pl.BlockSpec((1, V), lambda i: (0, 0)),                 # b2
        ],
        out_specs=pl.BlockSpec((block_b, 1, V), lambda i: (i, 0, 0)),
    )

    marg = pl.pallas_call(
        nibm1_kernel,
        out_shape=jax.ShapeDtypeStruct((Bp, 1, V), x.dtype),
        grid_spec=grid_spec,
        compiler_params=pltpu.CompilerParams(
            dimension_semantics=("parallel",)),
    )(x, p_align, w1b, b1r, w2b, b2r)

    marg = marg[:B]
    # torch.bmm(p_align.repeat(1, Ty, 1), py) just repeats the same marginal
    # row Ty times -> broadcast in the wrapper (free at the consumer).
    return jnp.broadcast_to(marg, (B, Ty, V))


def neural_ibm1_reference(x, seq_mask_x, seq_len_x, longest_y, params):
    """Pure-JAX f32 reference mirroring the PyTorch forward."""
    w1, b1, w2, b2 = params
    B, Tx, Dx = x.shape
    h = jnp.maximum(x.reshape(B * Tx, Dx) @ w1 + b1, 0.0)
    logits = h @ w2 + b2
    py = jax.nn.softmax(logits, axis=-1).reshape(B, Tx, -1)
    p_align = seq_mask_x.astype(x.dtype) / seq_len_x.astype(x.dtype)[:, None]
    p_align = jnp.repeat(p_align[:, None, :], longest_y, axis=1)    # [B, Ty, Tx]
    return jnp.einsum('btx,bxv->btv', p_align, py)


if __name__ == "__main__":
    # Small, module-consistent shapes (input_size=Dx, hidden_size=H, tgt_vocab=V).
    B, Tx, Ty = 16, 16, 12
    Dx, H, V = 32, 64, 256

    key = jax.random.PRNGKey(0)
    kx, kw1, kb1, kw2, kb2 = jax.random.split(key, 5)

    x = jax.random.normal(kx, (B, Tx, Dx), dtype=jnp.float32)

    # Deterministic sequence lengths in [1, Tx] and the matching mask.
    seq_len_x = (jnp.arange(B, dtype=jnp.int32) % Tx) + 1
    seq_mask_x = jnp.arange(Tx)[None, :] < seq_len_x[:, None]       # [B, Tx] bool

    # Linear weights stored as [in, out].
    w1 = jax.random.normal(kw1, (Dx, H), dtype=jnp.float32) * 0.1
    b1 = jax.random.normal(kb1, (H,), dtype=jnp.float32) * 0.01
    w2 = jax.random.normal(kw2, (H, V), dtype=jnp.float32) * 0.1
    b2 = jax.random.normal(kb2, (V,), dtype=jnp.float32) * 0.01
    params = (w1, b1, w2, b2)

    # block_b=8 -> 2 grid steps of 8*16=128 rows each.
    out = neural_ibm1_forward(x, seq_mask_x, seq_len_x, Ty, params, block_b=8)
    out = jax.block_until_ready(out)

    ref = neural_ibm1_reference(x, seq_mask_x, seq_len_x, Ty, params)
    assert out.shape == (B, Ty, V)
    # bf16 matmuls (f32 accumulate) -> slightly looser tolerance than pure f32.
    assert jnp.allclose(out, ref, atol=2e-3, rtol=2e-2), "mismatch vs reference"

    print("KERNEL_OK")
</pallas_src>

<mosaic_0001>
module attributes {stable_mosaic.version = 11 : i64} {
  func.func @nibm1_kernel(%arg0: i32, %arg1: memref<8x16x32xf32, #tpu.memory_space<vmem>>, %arg2: memref<8x16xf32, #tpu.memory_space<vmem>>, %arg3: memref<32x64xbf16, #tpu.memory_space<vmem>>, %arg4: memref<1x64xf32, #tpu.memory_space<vmem>>, %arg5: memref<64x256xbf16, #tpu.memory_space<vmem>>, %arg6: memref<1x256xf32, #tpu.memory_space<vmem>>, %arg7: memref<8x1x256xf32, #tpu.memory_space<vmem>>) attributes {dimension_semantics = [#tpu.dimension_semantics<parallel>], iteration_bounds = array<i64: 2>, scalar_prefetch = 0 : i64, scratch_operands = 0 : i64, tpu.core_type = #tpu.core_type<tc>, window_params = [{transform_indices = @transform_0, window_bounds = array<i64: 8, 16, 32>}, {transform_indices = @transform_1, window_bounds = array<i64: 8, 16>}, {pipeline_mode = #tpu.pipeline_mode<synchronous>, transform_indices = @transform_2, window_bounds = array<i64: 32, 64>}, {pipeline_mode = #tpu.pipeline_mode<synchronous>, transform_indices = @transform_3, window_bounds = array<i64: 1, 64>}, {pipeline_mode = #tpu.pipeline_mode<synchronous>, transform_indices = @transform_4, window_bounds = array<i64: 64, 256>}, {pipeline_mode = #tpu.pipeline_mode<synchronous>, transform_indices = @transform_5, window_bounds = array<i64: 1, 256>}, {transform_indices = @transform_6, window_bounds = array<i64: 8, 1, 256>}]} {
    %c0 = arith.constant 0 : index
    %c0_0 = arith.constant 0 : index
    %c0_1 = arith.constant 0 : index
    %0 = vector.load %arg1[%c0, %c0_0, %c0_1] : memref<8x16x32xf32, #tpu.memory_space<vmem>>, vector<8x16x32xf32>
    %1 = vector.shape_cast %0 : vector<8x16x32xf32> to vector<128x32xf32>
    %2 = arith.truncf %1 : vector<128x32xf32> to vector<128x32xbf16>
    %c0_2 = arith.constant 0 : index
    %c0_3 = arith.constant 0 : index
    %3 = vector.load %arg3[%c0_2, %c0_3] : memref<32x64xbf16, #tpu.memory_space<vmem>>, vector<32x64xbf16>
    %cst = arith.constant dense<0.000000e+00> : vector<128x64xf32>
    %4 = tpu.matmul %2, %3, %cst {dimension_numbers = #tpu.dot_dimension_numbers<[1], [0], [0], [1], [0, 0, 1, 1], [], []>} : vector<128x32xbf16>, vector<32x64xbf16>, vector<128x64xf32> -> vector<128x64xf32>
    %c0_4 = arith.constant 0 : index
    %c0_5 = arith.constant 0 : index
    %5 = vector.load %arg4[%c0_4, %c0_5] : memref<1x64xf32, #tpu.memory_space<vmem>>, vector<1x64xf32>
    %6 = vector.broadcast %5 : vector<1x64xf32> to vector<128x64xf32>
    %7 = arith.addf %4, %6 : vector<128x64xf32>
    %cst_6 = arith.constant 0.000000e+00 : f32
    %8 = vector.broadcast %cst_6 : f32 to vector<128x64xf32>
    %9 = arith.maximumf %7, %8 : vector<128x64xf32>
    %10 = arith.truncf %9 : vector<128x64xf32> to vector<128x64xbf16>
    %c0_7 = arith.constant 0 : index
    %c0_8 = arith.constant 0 : index
    %11 = vector.load %arg5[%c0_7, %c0_8] : memref<64x256xbf16, #tpu.memory_space<vmem>>, vector<64x256xbf16>
    %cst_9 = arith.constant dense<0.000000e+00> : vector<128x256xf32>
    %12 = tpu.matmul %10, %11, %cst_9 {dimension_numbers = #tpu.dot_dimension_numbers<[1], [0], [0], [1], [0, 0, 1, 1], [], []>} : vector<128x64xbf16>, vector<64x256xbf16>, vector<128x256xf32> -> vector<128x256xf32>
    %c0_10 = arith.constant 0 : index
    %c0_11 = arith.constant 0 : index
    %13 = vector.load %arg6[%c0_10, %c0_11] : memref<1x256xf32, #tpu.memory_space<vmem>>, vector<1x256xf32>
    %14 = vector.broadcast %13 : vector<1x256xf32> to vector<128x256xf32>
    %15 = arith.addf %12, %14 : vector<128x256xf32>
    %16 = vector.shape_cast %15 : vector<128x256xf32> to vector<8x16x256xf32>
    %cst_12 = arith.constant dense<0xFF800000> : vector<8x16xf32>
    %17 = vector.multi_reduction <maximumf>, %16, %cst_12 [2] : vector<8x16x256xf32> to vector<8x16xf32>
    %18 = vector.shape_cast %17 : vector<8x16xf32> to vector<8x16x1xf32>
    %19 = vector.broadcast %18 : vector<8x16x1xf32> to vector<8x16x256xf32>
    %20 = arith.subf %16, %19 : vector<8x16x256xf32>
    %21 = math.exp %20 : vector<8x16x256xf32>
    %cst_13 = arith.constant dense<0.000000e+00> : vector<8x16xf32>
    %22 = vector.multi_reduction <add>, %21, %cst_13 [2] : vector<8x16x256xf32> to vector<8x16xf32>
    %c0_14 = arith.constant 0 : index
    %c0_15 = arith.constant 0 : index
    %23 = vector.load %arg2[%c0_14, %c0_15] : memref<8x16xf32, #tpu.memory_space<vmem>>, vector<8x16xf32>
    %24 = tpu.reciprocal %22 : vector<8x16xf32> -> vector<8x16xf32>
    %25 = arith.mulf %23, %24 : vector<8x16xf32>
    %26 = vector.shape_cast %25 : vector<8x16xf32> to vector<8x1x16xf32>
    "tpu.trace_start"() <{level = 10 : i32, message = "bqx,bxv->bqv"}> : () -> ()
    %cst_16 = arith.constant dense<0.000000e+00> : vector<8x1x256xf32>
    %27 = tpu.matmul %26, %21, %cst_16 {dimension_numbers = #tpu.dot_dimension_numbers<[2], [1], [1], [2], [0, 0, 0, 1, 1, 2], [0], [0]>} : vector<8x1x16xf32>, vector<8x16x256xf32>, vector<8x1x256xf32> -> vector<8x1x256xf32>
    "tpu.trace_stop"() : () -> ()
    %c0_17 = arith.constant 0 : index
    %c0_18 = arith.constant 0 : index
    %c0_19 = arith.constant 0 : index
    %28 = vector.load %arg7[%c0_17, %c0_18, %c0_19] : memref<8x1x256xf32, #tpu.memory_space<vmem>>, vector<8x1x256xf32>
    tpu.vector_store %arg7[%c0_17, %c0_18, %c0_19], %27 {strides = array<i32>} : memref<8x1x256xf32, #tpu.memory_space<vmem>>, vector<8x1x256xf32>,
    return
  }
  func.func @transform_0(%arg0: i32) -> (i32, i32, i32) {
    %c0_i32 = arith.constant 0 : i32
    %c0_i32_0 = arith.constant 0 : i32
    %c0_i32_1 = arith.constant 0 : i32
    return %arg0, %c0_i32, %c0_i32_0 : i32, i32, i32
  }
  func.func @transform_1(%arg0: i32) -> (i32, i32) {
    %c0_i32 = arith.constant 0 : i32
    %c0_i32_0 = arith.constant 0 : i32
    return %arg0, %c0_i32 : i32, i32
  }
  func.func @transform_2(%arg0: i32) -> (i32, i32) {
    %c0_i32 = arith.constant 0 : i32
    %c0_i32_0 = arith.constant 0 : i32
    %c0_i32_1 = arith.constant 0 : i32
    return %c0_i32, %c0_i32_0 : i32, i32
  }
  func.func @transform_3(%arg0: i32) -> (i32, i32) {
    %c0_i32 = arith.constant 0 : i32
    %c0_i32_0 = arith.constant 0 : i32
    %c0_i32_1 = arith.constant 0 : i32
    return %c0_i32, %c0_i32_0 : i32, i32
  }
  func.func @transform_4(%arg0: i32) -> (i32, i32) {
    %c0_i32 = arith.constant 0 : i32
    %c0_i32_0 = arith.constant 0 : i32
    %c0_i32_1 = arith.constant 0 : i32
    return %c0_i32, %c0_i32_0 : i32, i32
  }
  func.func @transform_5(%arg0: i32) -> (i32, i32) {
    %c0_i32 = arith.constant 0 : i32
    %c0_i32_0 = arith.constant 0 : i32
    %c0_i32_1 = arith.constant 0 : i32
    return %c0_i32, %c0_i32_0 : i32, i32
  }
  func.func @transform_6(%arg0: i32) -> (i32, i32, i32) {
    %c0_i32 = arith.constant 0 : i32
    %c0_i32_0 = arith.constant 0 : i32
    %c0_i32_1 = arith.constant 0 : i32
    return %arg0, %c0_i32, %c0_i32_0 : i32, i32, i32
  }
}

</mosaic_0001>

<bundles_post_ra>
// kernel: tpu_custom_call.1
= control target key start
LH: loop header
LB: loop body
LE: loop exit
PB: predicated region body
PF: predicated region fallthrough
CT: control target
= control target key end

     0   :  { %s3262_s0 = inlined_call_operand.hbm [shape: f32[16,16,32], index: 0, kind: input, shape index: {}]   ;;  %s3263_s1 = inlined_call_operand.hbm [shape: f32[16,16], index: 1, kind: input, shape index: {}]   ;;  %s3264_s2 = inlined_call_operand.hbm [shape: bf16[32,64], index: 2, kind: input, shape index: {}]   ;;  %s3265_s3 = inlined_call_operand.vmem [shape: f32[1,64], index: 3, kind: input, shape index: {}]   ;;  %s3266_s4 = inlined_call_operand.hbm [shape: bf16[64,256], index: 4, kind: input, shape index: {}]   ;;  %s3267_s5 = inlined_call_operand.vmem [shape: f32[1,256], index: 5, kind: input, shape index: {}]   ;;  %s3268_s6 = inlined_call_operand.hbm [shape: f32[16,1,256], index: 6, kind: output, shape index: {}]  }
   0x1   :  { %3276 = sst [smem:[#allocation17_spill]] %s3262_s0 }
   0x2   :  { %3277 = sst [smem:[#allocation18_spill]] %s3264_s2 }
   0x3   :  { %3278 = sst [smem:[#allocation19_spill]] %s3266_s4 }
   0x4   :  { %11 = vsyncpa [#allocation3], 0 }
   0x5   :  { %13 = vsyncpa [#allocation3 + $0x1], 0 }
   0x6   :  { %14 = vsyncpa [#allocation6], 0 }
   0x7   :  { %16 = vsyncpa [#allocation6 + $0x1], 0 }
   0x8   :  { %17 = vsyncpa [#allocation9], 0 }
   0x9   :  { %18 = vsyncpa [#allocation4], 0 }
   0xa   :  { %20 = vsyncpa [#allocation4 + $0x1], 0  ;;  %s2529_s21 = smov 0   ;;  %s2531_s22 = smov 0  }
   0xb   :  { %s2533_s23 = smov 0   ;;  %s2535_s24 = smov 0  }
   0xc LB: > { %s2550_s25 = sadd.s32 4294967295, %s2478_s24   ;;  %s1969_s26 = sadd.s32 4294967294, %s2478_s24   ;;  %s2478_s24 = sphi %s2535_s24, %s3316_s24   ;;  %s2474_s23 = sphi %s2533_s23, %s3315_s23   ;;  %s2470_s22 = sphi %s2531_s22, %s3314_s22   ;;  %s2466_s21 = sphi %s2529_s21, %s3313_s21  }
   0xd   : > { %p46_p0 = scmp.ne.s32.totalorder %s2470_s22, %s2466_s21  ;;  %p3269_p1 = scmp.eq.s32.totalorder %s2550_s25, 0 }
   0xe   : > { %p186_p3 = scmp.eq.s32.totalorder %s1969_s26, 1  ;;  %p1970_p5 = scmp.ge.s32.totalorder %s2478_s24, 1 }
   0xf   : > { %p2559_p4 = por %p3269_p1, %p46_p0  ;;  %p193_p7 = scmp.lt.s32.totalorder %s2478_s24, 3 }
  0x10   : > { %p2564_p6 = por %p186_p3, %p46_p0  ;;  %s2480_s30 = smov [#allocation7]  }
  0x11   : > { %s3279_s27 = scalar_select %p2559_p4, 1, 0 }
  0x12   : > { %s3280_s28 = scalar_select %p2564_p6, 1, 0 }
  0x13   : > { %p2569_p8 = pnand %p1970_p5, %p193_p7  ;;  %s205_s7 = sshll.u32 %s2480_s30, 4  ;;  %s2573_s7 = int_to_ptr.vmem [resolvable:$true] %s205_s7 }
  0x14   : > { %s2481_s9 = smov [#allocation8]   ;;  %s3283_s2 = sld [smem:[#allocation18_spill]] }
  0x15   : > { %s3281_s29 = scalar_select %p2569_p8, 1, 0 }
  0x16   : > { %p2107_p9 = pneg %p2569_p8  ;;  %s221_s10 = sshll.u32 %s2481_s9, 4  ;;  %s2584_s10 = int_to_ptr.vmem [resolvable:$true] %s221_s10 }
  0x18   : > { %p2580_p11 = pnand %p2107_p9, %p3269_p1 }
  0x1a   : > { %s2284_s13 = scalar_lea.hbm %s3283_s2, 256  ;;  %p2286_p13 = pneg %p2580_p11 }
  0x1b   : > { %p2285_p12 = scmp.ne.s32.totalorder %s3283_s2, %s2284_s13  ;;  %p2291_p5 = scmp.lt.u32.totalorder %s2284_s13, %s3283_s2 }
  0x1d   : > { %p2287_p0 = pnand %p2286_p13, %p2285_p12 }
  0x1f   : > { %p2288_p3 = pneg %p2287_p0 }
  0x21   : > { %p2293_p7 = pnand %p2291_p5, %p2288_p3 }
  0x23   : > { %2296 = shalt.err (!%p2293_p7)
}
  0x24   : > { %s2297_s18 = scalar_lea.vmem %s2573_s7, 256  ;;  %p2305_p2 = scmp.lt.s32.totalorder %s2573_s7, %s2573_s7 }
  0x25   : > { %p2298_p9 = scmp.ne.s32.totalorder %s2573_s7, %s2297_s18  ;;  %p2306_p12 = scmp.lt.s32.totalorder %s2297_s18, %s2297_s18 }
  0x27   : > { %p2300_p10 = pnand %p2298_p9, %p2286_p13  ;;  %p2307_p0 = por %p2306_p12, %p2305_p2 }
  0x29   : > { %p2301_p1 = pneg %p2300_p10 }
  0x2b   : > { %p2308_p6 = pnand %p2307_p0, %p2301_p1 }
  0x2d   : > { %2311 = shalt.err (!%p2308_p6)
}
  0x2e   : > { %s2482_s19 = smov 64   ;;  %s2483_s20 = smov 4  }
  0x2f   : > { %2110 = dma.hbm_to_vmem [thread:$0]  (!%p2580_p11), %s3283_s2, 256, %s2573_s7, [#allocation6], %s2482_s19, %s2482_s19, %s2483_s20  }
  0x30   : > { %s3284_s4 = sld [smem:[#allocation19_spill]] }
  0x36   : > { %s2312_s12 = scalar_lea.hbm %s3284_s4, 1024 }
  0x37   : > { %p2313_p2 = scmp.ne.s32.totalorder %s3284_s4, %s2312_s12  ;;  %p2319_p10 = scmp.lt.u32.totalorder %s2312_s12, %s3284_s4 }
  0x39   : > { %p2315_p1 = pnand %p2313_p2, %p2286_p13 }
  0x3b   : > { %p2316_p6 = pneg %p2315_p1 }
  0x3d   : > { %p2321_p3 = pnand %p2319_p10, %p2316_p6 }
  0x3f   : > { %2324 = shalt.err (!%p2321_p3)
}
  0x40   : > { %s2325_s7 = scalar_lea.vmem %s2584_s10, 1024  ;;  %p2333_p12 = scmp.lt.s32.totalorder %s2584_s10, %s2584_s10 }
  0x41   : > { %p2326_p5 = scmp.ne.s32.totalorder %s2584_s10, %s2325_s7  ;;  %p2334_p0 = scmp.lt.s32.totalorder %s2325_s7, %s2325_s7 }
  0x43   : > { %p2328_p7 = pnand %p2326_p5, %p2286_p13  ;;  %p2335_p2 = por %p2334_p0, %p2333_p12 }
  0x45   : > { %p2329_p9 = pneg %p2328_p7 }
  0x47   : > { %p2336_p1 = pnand %p2335_p2, %p2329_p9 }
  0x49   : > { %2339 = shalt.err (!%p2336_p1)
}
  0x4a   : > { %s3270_s17 = smov 128   ;;  %s3271_s18 = smov 8  }
  0x4b   : > { %2113 = dma.hbm_to_vmem [thread:$0]  (!%p2580_p11), %s3284_s4, 1024, %s2584_s10, [#allocation9], %s3270_s17, %s3270_s17, %s3271_s18  }
  0x4c   : > { %s2642_s26 = sadd.s32 1, %s2478_s24   ;;  %s33_s9 = sadd.s32 1, %s2474_s23 }
  0x4d   : > { %s30_s30 = ssub.s32 %s2478_s24, %s2642_s26  ;;  %p40_p6 = scmp.ne.s32.totalorder %s2474_s23, %s2470_s22 }
  0x4e   : > { %p31_p13 = scmp.eq.s32.totalorder %s30_s30, 0  ;;  %p41_p10 = scmp.eq.s32.totalorder %s2478_s24, 0 }
  0x4f   : > { %p3286_p5 = scmp.eq.s32.totalorder %s2550_s25, 1  ;;  %p2127_p9 = scmp.lt.s32.totalorder %s2478_s24, 2 }
  0x50   : > { %s2651_s11 = scalar_select %p31_p13, %s2474_s23, %s33_s9  }
  0x51   : > { %p42_p3 = por %p41_p10, %p40_p6  ;;  %p2655_p7 = por %p3286_p5, %p40_p6 }
  0x52   : > { %3285 = sst [smem:[#allocation16_spill]] %s2651_s11  ;;  %s2661_s12 = sand.u32 1, %s2474_s23  }
  0x53   : > { %s3287_s8 = scalar_select %p2655_p7, 1, 0 }
  0x54   : > { %s1974_s10 = sshll.u32 %s2661_s12, 7  ;;  %s2028_s13 = sshll.u32 %s2478_s24, 11 }
  0x55   : > { %s3288_s0 = sld [smem:[#allocation17_spill]]  ;;  %s242_s7 = scalar_lea.vmem [#allocation2], %s1974_s10 }
  0x56   : > { %s250_s19 = sshll.u32 %s242_s7, 4  ;;  %p2672_p11 = pnand %p2127_p9, %p42_p3  ;;  %s2670_s19 = int_to_ptr.vmem [resolvable:$true] %s250_s19 }
  0x57   : > { %s1978_s9 = sshll.u32 %s2661_s12, 3  ;;  %s239_s17 = scalar_lea.sflag [#allocation3], %s2661_s12 }
  0x58   : > { %p2342_p0 = pneg %p2672_p11 }
  0x5b   : > { %s2668_s16 = scalar_lea.hbm %s3288_s0, %s2028_s13  ;;  %s2345_s15 = scalar_lea.hbm %s3288_s0, 4096 }
  0x5c   : > { %s2340_s14 = scalar_lea.hbm %s2668_s16, 2048  ;;  %p2346_p13 = scmp.lt.u32.totalorder %s2668_s16, %s3288_s0 }
  0x5d   : > { %p2341_p12 = scmp.ne.s32.totalorder %s2668_s16, %s2340_s14  ;;  %p2347_p6 = scmp.lt.u32.totalorder %s2345_s15, %s2340_s14 }
  0x5e   : > { %p2349_p3 = scmp.lt.u32.totalorder %s2340_s14, %s2668_s16 }
  0x5f   : > { %p2343_p2 = pnand %p2342_p0, %p2341_p12  ;;  %p2348_p10 = por %p2347_p6, %p2346_p13 }
  0x61   : > { %p2344_p1 = pneg %p2343_p2  ;;  %p2350_p5 = por %p2349_p3, %p2348_p10 }
  0x63   : > { %p2351_p9 = pnand %p2350_p5, %p2344_p1 }
  0x65   : > { %2354 = shalt.err (!%p2351_p9)
}
  0x66   : > { %s2355_s30 = scalar_lea.vmem %s2670_s19, 2048  ;;  %s2486_s10 = smov [#allocation2]  }
  0x67   : > { %p2356_p12 = scmp.ne.s32.totalorder %s2670_s19, %s2355_s30  ;;  %s2360_s13 = sshll.u32 %s2486_s10, 4  ;;  %s2361_s13 = int_to_ptr.vmem [resolvable:$false] %s2360_s13 }
  0x68   : > { %s2362_s18 = scalar_lea.vmem %s2361_s13, 4096  ;;  %p2363_p4 = scmp.lt.s32.totalorder %s2670_s19, %s2361_s13 }
  0x69   : > { %p2358_p2 = pnand %p2356_p12, %p2342_p0  ;;  %p2364_p13 = scmp.lt.s32.totalorder %s2362_s18, %s2355_s30 }
  0x6b   : > { %p2359_p7 = pneg %p2358_p2  ;;  %p2365_p6 = por %p2364_p13, %p2363_p4 }
  0x6d   : > { %p2366_p10 = pnand %p2365_p6, %p2359_p7 }
  0x6f   : > { %2369 = shalt.err (!%p2366_p10)
}
  0x70   : > { %s3290_s14 = smov 8   ;;  %s3291_s15 = smov 128  }
  0x71   : > { %2117 = dma.hbm_to_vmem [thread:$0]  (!%p2672_p11), %s2668_s16, 2048, %s2670_s19, %s239_s17, %s3291_s15, %s3291_s15, %s3290_s14  }
  0x72   : > { %s1979_s7 = sshll.u32 %s2478_s24, 7  ;;  %s264_s18 = scalar_lea.vmem [#allocation5], %s1978_s9 }
  0x73   : > { %s2713_s13 = scalar_lea.hbm %s3263_s1, %s1979_s7  ;;  %s271_s0 = sshll.u32 %s264_s18, 4  ;;  %s272_s0 = int_to_ptr.vmem [resolvable:$true] %s271_s0 }
  0x74   : > { %s3292_s2 = sand.u32 1, %s2478_s24   ;;  %s2370_s11 = scalar_lea.hbm %s2713_s13, 128 }
  0x75   : > { %s261_s4 = scalar_lea.sflag [#allocation6], %s3292_s2  ;;  %p2371_p4 = scmp.ne.s32.totalorder %s2713_s13, %s2370_s11 }
  0x76   : > { %s2375_s19 = scalar_lea.hbm %s3263_s1, 256  ;;  %p2376_p3 = scmp.lt.u32.totalorder %s2713_s13, %s3263_s1 }
  0x77   : > { %p2373_p7 = pnand %p2371_p4, %p2342_p0  ;;  %p2377_p5 = scmp.lt.u32.totalorder %s2375_s19, %s2370_s11 }
  0x78   : > { %p2379_p12 = scmp.lt.u32.totalorder %s2370_s11, %s2713_s13 }
  0x79   : > { %p2374_p1 = pneg %p2373_p7  ;;  %p2378_p9 = por %p2377_p5, %p2376_p3 }
  0x7b   : > { %p2380_p2 = por %p2379_p12, %p2378_p9 }
  0x7d   : > { %p2381_p13 = pnand %p2380_p2, %p2374_p1 }
  0x7f   : > { %2384 = shalt.err (!%p2381_p13)
}
  0x80   : > { %s2385_s2 = scalar_lea.vmem %s272_s0, 128  ;;  %s2487_s9 = smov [#allocation5]  }
  0x81   : > { %p2386_p6 = scmp.ne.s32.totalorder %s272_s0, %s2385_s2  ;;  %s2390_s15 = sshll.u32 %s2487_s9, 4  ;;  %s2391_s15 = int_to_ptr.vmem [resolvable:$false] %s2390_s15 }
  0x82   : > { %s2392_s7 = scalar_lea.vmem %s2391_s15, 256  ;;  %p2393_p7 = scmp.lt.s32.totalorder %s272_s0, %s2391_s15 }
  0x83   : > { %p2388_p10 = pnand %p2386_p6, %p2342_p0  ;;  %p2394_p8 = scmp.lt.s32.totalorder %s2392_s7, %s2385_s2 }
  0x85   : > { %p2389_p4 = pneg %p2388_p10  ;;  %p2395_p3 = por %p2394_p8, %p2393_p7 }
  0x87   : > { %p2396_p5 = pnand %p2395_p3, %p2389_p4 }
  0x89   : > { %2399 = shalt.err (!%p2396_p5)
}
  0x8a   : > { %2120 = dma.hbm_to_vmem [thread:$0]  (!%p2672_p11), %s2713_s13, 128, %s272_s0, %s261_s4  }
  0x8b   : > { %p3293_p1 = scmp.ne.s32.totalorder %s3281_s29, 0 }
  0x8c   : > { %s2741_s11 = sand.u32 (!%p3293_p1), 1, %s2470_s22   ;;  %p3294_p8 = scmp.ne.s32.totalorder (!%p3293_p1), %s3279_s27, 0 }
  0x8d   : > { %280 = sbr.rel (%p3293_p1) target bundleno = 1249 (0x4e1), region = 44  ;;  %s1981_s10 = sshll.u32 (!%p3293_p1), %s2741_s11, 7 }
  0x8e   : > { %s283_s30 = scalar_lea.sflag (!%p3293_p1), [#allocation3], %s2741_s11  ;;  %s2745_s18 = scalar_lea.vmem (!%p3293_p1), [#allocation2], %s1981_s10 }
  0x94   : > { %2445 = dma.done.wait (%p3294_p8), %s283_s30, 2048  }
  0x95   : > { %2447 = vsyncadd (%p3294_p8), %s283_s30, 4294965248  ;;  %s291_s0 = sand.u32 1, %s2550_s25   ;;  %s1982_s4 = sshll.u32 %s2741_s11, 3 }
  0x96   : > { %s292_s29 = scalar_lea.sflag [#allocation6], %s291_s0  ;;  %s2753_s20 = scalar_lea.vmem [#allocation5], %s1982_s4 }
  0x97   : > { %2449 = dma.done.wait (%p3294_p8), %s292_s29, 128  }
  0x98   : > { %2451 = vsyncadd (%p3294_p8), %s292_s29, 4294967168  ;;  %p3295_p11 = scmp.eq.s32.totalorder %s2550_s25, 0 }
  0x9a   : > { %2453 = dma.done.wait (%p3295_p11), [#allocation6], 256   ;;  %p3296_p0 = pmov %p3295_p11 }
  0x9c   : > { %2455 = vsyncadd (%p3296_p0), [#allocation6], 4294967040  ;;  %p3297_p9 = pmov %p3296_p0 }
  0x9d   : > { %p3298_p12 = pmov %p3296_p0 }
  0x9e   : > { %2457 = dma.done.wait (%p3297_p9), [#allocation9], 1024  }
  0x9f   : > { %2459 = vsyncadd (%p3298_p12), [#allocation9], 4294966272  ;;  %v2174_v0 = vld [vmem:[#allocation7] sm:$0xff]   ;;  %v2175_v1 = vld [vmem:[#allocation7 + $0x8] sm:$0xff]   ;;  %vm387_vm0 = vcmask 261120   ;;  %v2488_v34 = vmov 0  }
  0xa0   : > { %2041 = vmatprep.subr.bf16.mxu0 %v2174_v0  ;;  %v340_v2 = vld [vmem:[%s2745_s18] sm:$0xff]  ;;  %v341_v3 = vld [vmem:[%s2745_s18 + $0x8] sm:$0xff]  ;;  %v342_v5 = vld [vmem:[%s2745_s18 + $0x10] sm:$0xff]  ;;  %650 = vmatprep.mubr.bf16.mxu1 %v2488_v34  ;;  %vm593_vm1 = vcmask 523264   ;;  %vm967_vm2 = vcmask 130112   ;;  %vm1032_vm3 = vcmask 1041409  }
  0xa1   : > { %2042 = vmatpush3.bf16.msra.mxu0 %v2174_v0  ;;  %v356_v4 = vpack.c.bf16 %v341_v3, %v340_v2  ;;  %v343_v6 = vld [vmem:[%s2745_s18 + $0x18] sm:$0xff]  ;;  %v344_v7 = vld [vmem:[%s2745_s18 + $0x20] sm:$0xff]  ;;  %v345_v8 = vld [vmem:[%s2745_s18 + $0x28] sm:$0xff]  ;;  %vm1034_vm4 = vcmask 1042434   ;;  %vm1036_vm5 = vcmask 1043459   ;;  %vm1038_vm6 = vcmask 1044484  }
  0xa2   : > { %2043 = vmatprep.subr.bf16.mxu0 %v2175_v1  ;;  %v357_v9 = vpack.c.bf16 %v343_v6, %v342_v5  ;;  %v358_v10 = vpack.c.bf16 %v345_v8, %v344_v7  ;;  %v2176_v11 = vld [vmem:[#allocation8 + $0x4] ss:$8 sps:$4 sm:$0xff]   ;;  %v2178_v12 = vld [vmem:[#allocation8] ss:$8 sps:$4 sm:$0xff]   ;;  %v346_v13 = vld [vmem:[%s2745_s18 + $0x30] sm:$0xff]  ;;  %vm1040_vm7 = vcmask 1045509  }
  0xa3   : > { %2045 = vmatprep.mubr.msk.bf16.mxu0 %vm387_vm0, %v356_v4  ;;  %v2179_v14 = vld [vmem:[#allocation8 + $0x14] ss:$8 sps:$4 sm:$0xff]   ;;  %618 = vmatprep.subr.bf16.mxu1 %v2176_v11  ;;  %v2181_v16 = vld [vmem:[#allocation8 + $0x10] ss:$8 sps:$4 sm:$0xff]   ;;  %v348_v17 = vld [vmem:[%s2745_s18 + $0x40] sm:$0xff]  ;;  %vm1042_vm8 = vcmask 1046534  }
  0xa4   : > { %v347_v15 = vld [vmem:[%s2745_s18 + $0x38] sm:$0xff]  ;;  %619 = vmatpush1.bf16.msra.mxu1 %v2178_v12  ;;  %v349_v18 = vld [vmem:[%s2745_s18 + $0x48] sm:$0xff]  ;;  %v350_v21 = vld [vmem:[%s2745_s18 + $0x50] sm:$0xff]  ;;  %vm1044_vm9 = vcmask 1047559   ;;  %vm1098_vm10 = vcmask 130048   ;;  %s1985_s19 = sshll.u32 %s2741_s11, 4 }
  0xa5   : > { %2044 = vmatpush3.bf16.msra.mxu0 %v2175_v1  ;;  %620 = vmatprep.subr.bf16.mxu1 %v2179_v14  ;;  %v359_v19 = vpack.c.bf16 %v347_v15, %v346_v13  ;;  %v360_v20 = vpack.c.bf16 %v349_v18, %v348_v17  ;;  %v351_v22 = vld [vmem:[%s2745_s18 + $0x58] sm:$0xff]  ;;  %v352_v23 = vld [vmem:[%s2745_s18 + $0x60] sm:$0xff]  ;;  %v353_v24 = vld [vmem:[%s2745_s18 + $0x68] sm:$0xff]  ;;  %s3171_s12 = scalar_lea.vmem [#allocation10], %s1985_s19  ;;  %s2030_s14 = sshll.u32 %s2550_s25, 8 }
  0xa6   : > { %v361_v25 = vpack.c.bf16 %v351_v22, %v350_v21  ;;  %v362_v26 = vpack.c.bf16 %v353_v24, %v352_v23  ;;  %v354_v27 = vld [vmem:[%s2745_s18 + $0x70] sm:$0xff]  ;;  %v355_v28 = vld [vmem:[%s2745_s18 + $0x78] sm:$0xff]  ;;  %v2182_v30 = vld [vmem:[#allocation8 + $0x24] ss:$8 sps:$4 sm:$0xff]   ;;  %s1854_s2 = sshll.u32 %s3171_s12, 4  ;;  %s3212_s7 = scalar_lea.hbm %s3268_s6, %s2030_s14  ;;  %s3214_s2 = int_to_ptr.vmem [resolvable:$true] %s1854_s2 }
  0xa7   : > { %v363_v29 = vpack.c.bf16 %v355_v28, %v354_v27  ;;  %v2184_v31 = vld [vmem:[#allocation8 + $0x20] ss:$8 sps:$4 sm:$0xff]   ;;  %v2185_v32 = vld [vmem:[#allocation8 + $0x34] ss:$8 sps:$4 sm:$0xff]   ;;  %v2187_v33 = vld [vmem:[#allocation8 + $0x30] ss:$8 sps:$4 sm:$0xff]   ;;  %v3275_v28 = vlaneseq }
  0xa8   : > { %2046 = vmatmul.mubr.msk.bf16.vlgmr.msra.gmra.mrb[0].mxu0 %vm387_vm0, %v357_v9  ;;  %621 = vmatpush1.bf16.msra.mxu1 %v2181_v16  ;;  %v1986_v35 = vld [vmem:[%s3265_s3] ss:$0 sm:$0xff]  ;;  %s1840_s25 = scalar_lea.sflag [#allocation4], %s2741_s11  ;;  %s2400_s10 = scalar_lea.vmem %s3214_s2, 256 }
  0xa9   : > { %2049 = vmatprep.mubr.msk.bf16.mxu0 %vm387_vm0, %v358_v10  ;;  %622 = vmatprep.subr.bf16.mxu1 %v2182_v30  ;;  %p2401_p2 = scmp.ne.s32.totalorder %s3214_s2, %s2400_s10  ;;  %p3309_p13 = scmp.ne.s32.totalorder %s3287_s8, 0 }
  0xaa   : > { %s2491_s30 = smov [#allocation10]  }
  0xab   : > { %p2402_p6 = pnand %p2401_p2, %p3309_p13  ;;  %s2404_s18 = sshll.u32 %s2491_s30, 4  ;;  %s2405_s18 = int_to_ptr.vmem [resolvable:$false] %s2404_s18 }
  0xac   : > { %623 = vmatpush1.bf16.msra.mxu1 %v2184_v31  ;;  %v541_v31 = vld [vmem:[%s3267_s5] sm:$0x3]  ;;  %s2406_s0 = scalar_lea.vmem %s2405_s18, 512  ;;  %p2407_p4 = scmp.lt.s32.totalorder %s3214_s2, %s2405_s18 }
  0xad   : > { %624 = vmatprep.subr.bf16.mxu1 %v2185_v32  ;;  %p2403_p10 = pneg %p2402_p6  ;;  %p2408_p7 = scmp.lt.s32.totalorder %s2406_s0, %s2400_s10 }
  0xaf   : > { %p2409_p3 = por %p2408_p7, %p2407_p4 }
  0xb0   : > { %2050 = vmatmul.mubr.msk.bf16.gmra.mrb[4].mxu0 %vm387_vm0, %v359_v19  ;;  %625 = vmatpush1.bf16.msra.mxu1 %v2187_v33 }
  0xb1   : > { %2053 = vmatprep.mubr.msk.bf16.mxu0 %vm387_vm0, %v360_v20  ;;  %p2410_p5 = pnand %p2409_p3, %p2403_p10 }
  0xb8   : > { %2054 = vmatmul.mubr.msk.bf16.gmra.mrb[8].mxu0 %vm387_vm0, %v361_v25 }
  0xb9   : > { %2057 = vmatprep.mubr.msk.bf16.mxu0 %vm387_vm0, %v362_v26 }
  0xc0   : > { %2058 = vmatmul.mubr.msk.bf16.gmra.mrb[12].mxu0 %vm387_vm0, %v363_v29  ;;  %v2811_v29 = vshrl.u32 %v3275_v28, 7 }
  0xc2   : > { %v545_v30 = vsub.s32 0, %v2811_v29  ;;  %v549_v32 = vsub.s32 1, %v2811_v29 }
  0xc4   : > { %v2818_v33 = vrot.slane %v541_v31, %v545_v30 }
 0x17b   : > { %v2047_v36 = vpop.f32.mrb[0].mxu0 }
 0x17c   : > { %v455_v37 = vadd.f32 %v2047_v36, %v1986_v35  ;;  %v446_v38 = vpop.f32.mrb[1].mxu0 }
 0x17d   : > { %v447_v39 = vadd.f32 %v1986_v35, %v446_v38  ;;  %v2048_v40 = vpop.f32.mrb[2].mxu0 }
 0x17e   : > { %v458_v41 = vadd.f32 %v2048_v40, %v1986_v35  ;;  %v449_v42 = vpop.f32.mrb[3].mxu0  ;;  %v511_v44 = vmax.f32 %v455_v37, 0.0 }
 0x17f   : > { %v450_v43 = vadd.f32 %v1986_v35, %v449_v42  ;;  %v509_v46 = vmax.f32 %v447_v39, 0.0 }
 0x180   : > { %v512_v45 = vmax.f32 %v458_v41, 0.0 }
 0x181   : > { %v510_v47 = vmax.f32 %v450_v43, 0.0 }
 0x182   : > { %v526_v48 = vpack.c.bf16 %v512_v45, %v511_v44 }
 0x183   : > { %v525_v49 = vpack.c.bf16 %v510_v47, %v509_v46  ;;  %v2051_v50 = vpop.f32.mrb[4].mxu0 }
 0x184   : > { %v471_v51 = vadd.f32 %v2051_v50, %v1986_v35  ;;  %v462_v52 = vpop.f32.mrb[5].mxu0 }
 0x185   : > { %2005 = vmatmul.mubr.msk.bf16.vlgmr.msra.gmra.mrb[0].mxu1 %vm593_vm1, %v525_v49  ;;  %v463_v53 = vadd.f32 %v1986_v35, %v462_v52  ;;  %v2052_v54 = vpop.f32.mrb[6].mxu0 }
 0x186   : > { %v515_v55 = vmax.f32 %v471_v51, 0.0  ;;  %v474_v56 = vadd.f32 %v2052_v54, %v1986_v35  ;;  %v465_v57 = vpop.f32.mrb[7].mxu0  ;;  %660 = vmatprep.mubr.bf16.mxu1 %v2488_v34 }
 0x187   : > { %v513_v58 = vmax.f32 %v463_v53, 0.0  ;;  %v466_v59 = vadd.f32 %v1986_v35, %v465_v57 }
 0x188   : > { %v516_v60 = vmax.f32 %v474_v56, 0.0 }
 0x189   : > { %v514_v61 = vmax.f32 %v466_v59, 0.0 }
 0x18a   : > { %v528_v62 = vpack.c.bf16 %v516_v60, %v515_v55 }
 0x18b   : > { %v527_v63 = vpack.c.bf16 %v514_v61, %v513_v58  ;;  %v2055_v0 = vpop.f32.mrb[8].mxu0 }
 0x18c   : > { %v487_v1 = vadd.f32 %v2055_v0, %v1986_v35  ;;  %v478_v2 = vpop.f32.mrb[9].mxu0 }
 0x18d   : > { %2006 = vmatmul.mubr.msk.bf16.gmra.mrb[4].mxu1 %vm593_vm1, %v526_v48  ;;  %v479_v3 = vadd.f32 %v1986_v35, %v478_v2  ;;  %v2056_v4 = vpop.f32.mrb[10].mxu0 }
 0x18e   : > { %670 = vmatprep.mubr.bf16.mxu1 %v2488_v34  ;;  %v519_v5 = vmax.f32 %v487_v1, 0.0  ;;  %v490_v6 = vadd.f32 %v2056_v4, %v1986_v35  ;;  %v481_v7 = vpop.f32.mrb[11].mxu0 }
 0x18f   : > { %v517_v8 = vmax.f32 %v479_v3, 0.0  ;;  %v482_v9 = vadd.f32 %v1986_v35, %v481_v7 }
 0x190   : > { %v520_v10 = vmax.f32 %v490_v6, 0.0 }
 0x191   : > { %v518_v11 = vmax.f32 %v482_v9, 0.0 }
 0x192   : > { %v530_v12 = vpack.c.bf16 %v520_v10, %v519_v5 }
 0x193   : > { %v529_v13 = vpack.c.bf16 %v518_v11, %v517_v8  ;;  %v2059_v14 = vpop.f32.mrb[12].mxu0 }
 0x194   : > { %v503_v15 = vadd.f32 %v2059_v14, %v1986_v35  ;;  %v494_v16 = vpop.f32.mrb[13].mxu0 }
 0x195   : > { %2007 = vmatmul.mubr.msk.bf16.gmra.mrb[8].mxu1 %vm593_vm1, %v527_v63  ;;  %v495_v17 = vadd.f32 %v1986_v35, %v494_v16  ;;  %v2060_v18 = vpop.f32.mrb[14].mxu0 }
 0x196   : > { %680 = vmatprep.mubr.bf16.mxu1 %v2488_v34  ;;  %v523_v19 = vmax.f32 %v503_v15, 0.0  ;;  %v506_v20 = vadd.f32 %v2060_v18, %v1986_v35  ;;  %v497_v21 = vpop.f32.mrb[15].mxu0 }
 0x197   : > { %v521_v22 = vmax.f32 %v495_v17, 0.0  ;;  %v498_v23 = vadd.f32 %v1986_v35, %v497_v21  ;;  %v2820_v35 = vrot.slane %v541_v31, %v549_v32 }
 0x198   : > { %v524_v24 = vmax.f32 %v506_v20, 0.0 }
 0x199   : > { %v522_v25 = vmax.f32 %v498_v23, 0.0 }
 0x19a   : > { %v532_v26 = vpack.c.bf16 %v524_v24, %v523_v19 }
 0x19b   : > { %v531_v27 = vpack.c.bf16 %v522_v25, %v521_v22 }
 0x19d   : > { %2008 = vmatmul.mubr.msk.bf16.gmra.mrb[12].mxu1 %vm593_vm1, %v528_v62 }
 0x19e   : > { %690 = vmatprep.mubr.bf16.mxu1 %v2488_v34 }
 0x1a5   : > { %2009 = vmatmul.mubr.msk.bf16.gmra.mrb[16].mxu1 %vm593_vm1, %v529_v13 }
 0x1a6   : > { %700 = vmatprep.mubr.bf16.mxu1 %v2488_v34 }
 0x1ad   : > { %2010 = vmatmul.mubr.msk.bf16.gmra.mrb[20].mxu1 %vm593_vm1, %v530_v12 }
 0x1ae   : > { %710 = vmatprep.mubr.bf16.mxu1 %v2488_v34 }
 0x1b5   : > { %2011 = vmatmul.mubr.msk.bf16.gmra.mrb[24].mxu1 %vm593_vm1, %v531_v27 }
 0x1b6   : > { %720 = vmatprep.mubr.bf16.mxu1 %v2488_v34 }
 0x1bd   : > { %2012 = vmatmul.mubr.msk.bf16.gmra.mrb[28].mxu1 %vm593_vm1, %v532_v26 }
 0x258   : > { %v652_v36 = vpop.f32.mrb[0].mxu1 }
 0x259   : > { %v2823_v34 = vadd.f32 %v652_v36, %v2818_v33  ;;  %v654_v37 = vpop.f32.mrb[1].mxu1 }
 0x25a   : > { %v2826_v38 = vadd.f32 %v654_v37, %v2820_v35  ;;  %v656_v39 = vpop.f32.mrb[2].mxu1 }
 0x25b   : > { %v658_v40 = vpop.f32.mrb[3].mxu1  ;;  %v2829_v41 = vadd.f32 %v656_v39, %v2818_v33 }
 0x25c   : > { %v2832_v42 = vadd.f32 %v658_v40, %v2820_v35  ;;  %v731_v43 = vmax.f32 %v2823_v34, %v2826_v38 }
 0x25e   : > { %732 = vmax.xlane.f32.xlu0 %v731_v43  ;;  %v734_v45 = vmax.f32 %v2829_v41, %v2832_v42 }
 0x260   : > { %v662_v44 = vpop.f32.mrb[4].mxu1 }
 0x261   : > { %v2839_v46 = vadd.f32 %v662_v44, %v2818_v33  ;;  %v664_v47 = vpop.f32.mrb[5].mxu1 }
 0x262   : > { %v2842_v48 = vadd.f32 %v664_v47, %v2820_v35  ;;  %v666_v49 = vpop.f32.mrb[6].mxu1  ;;  %735 = vmax.xlane.f32.xlu0 %v734_v45 }
 0x263   : > { %v668_v50 = vpop.f32.mrb[7].mxu1  ;;  %v2845_v51 = vadd.f32 %v666_v49, %v2818_v33 }
 0x264   : > { %v2848_v52 = vadd.f32 %v668_v50, %v2820_v35  ;;  %v737_v53 = vmax.f32 %v2839_v46, %v2842_v48 }
 0x266   : > { %738 = vmax.xlane.f32.xlu1 %v737_v53  ;;  %v740_v55 = vmax.f32 %v2845_v51, %v2848_v52 }
 0x268   : > { %v672_v54 = vpop.f32.mrb[8].mxu1 }
 0x269   : > { %v2855_v56 = vadd.f32 %v672_v54, %v2818_v33  ;;  %v674_v57 = vpop.f32.mrb[9].mxu1 }
 0x26a   : > { %v2858_v58 = vadd.f32 %v674_v57, %v2820_v35  ;;  %v676_v59 = vpop.f32.mrb[10].mxu1  ;;  %741 = vmax.xlane.f32.xlu1 %v740_v55 }
 0x26b   : > { %v2861_v60 = vadd.f32 %v676_v59, %v2818_v33  ;;  %v678_v61 = vpop.f32.mrb[11].mxu1 }
 0x26c   : > { %v2864_v62 = vadd.f32 %v678_v61, %v2820_v35  ;;  %v743_v63 = vmax.f32 %v2855_v56, %v2858_v58 }
 0x26e   : > { %744 = vmax.xlane.f32.xlu0 %v743_v63  ;;  %v746_v0 = vmax.f32 %v2861_v60, %v2864_v62 }
 0x270   : > { %v682_v1 = vpop.f32.mrb[12].mxu1  ;;  %747 = vmax.xlane.f32.xlu1 %v746_v0 }
 0x271   : > { %v2871_v2 = vadd.f32 %v682_v1, %v2818_v33  ;;  %v684_v3 = vpop.f32.mrb[13].mxu1 }
 0x272   : > { %v2874_v4 = vadd.f32 %v684_v3, %v2820_v35  ;;  %v686_v5 = vpop.f32.mrb[14].mxu1 }
 0x273   : > { %v2877_v6 = vadd.f32 %v686_v5, %v2818_v33  ;;  %v688_v7 = vpop.f32.mrb[15].mxu1 }
 0x274   : > { %v2880_v8 = vadd.f32 %v688_v7, %v2820_v35  ;;  %v749_v9 = vmax.f32 %v2871_v2, %v2874_v4 }
 0x276   : > { %750 = vmax.xlane.f32.xlu0 %v749_v9  ;;  %v752_v10 = vmax.f32 %v2877_v6, %v2880_v8 }
 0x278   : > { %v692_v11 = vpop.f32.mrb[16].mxu1  ;;  %753 = vmax.xlane.f32.xlu1 %v752_v10 }
 0x279   : > { %v2887_v12 = vadd.f32 %v692_v11, %v2818_v33  ;;  %v694_v13 = vpop.f32.mrb[17].mxu1 }
 0x27a   : > { %v2890_v14 = vadd.f32 %v694_v13, %v2820_v35  ;;  %v696_v15 = vpop.f32.mrb[18].mxu1 }
 0x27b   : > { %v2893_v16 = vadd.f32 %v696_v15, %v2818_v33  ;;  %v698_v17 = vpop.f32.mrb[19].mxu1 }
 0x27c   : > { %v2896_v18 = vadd.f32 %v698_v17, %v2820_v35  ;;  %v755_v19 = vmax.f32 %v2887_v12, %v2890_v14 }
 0x27e   : > { %756 = vmax.xlane.f32.xlu0 %v755_v19  ;;  %v758_v20 = vmax.f32 %v2893_v16, %v2896_v18 }
 0x280   : > { %v702_v21 = vpop.f32.mrb[20].mxu1  ;;  %759 = vmax.xlane.f32.xlu1 %v758_v20 }
 0x281   : > { %v2903_v22 = vadd.f32 %v702_v21, %v2818_v33  ;;  %v704_v23 = vpop.f32.mrb[21].mxu1 }
 0x282   : > { %v2906_v24 = vadd.f32 %v704_v23, %v2820_v35  ;;  %v706_v25 = vpop.f32.mrb[22].mxu1 }
 0x283   : > { %v2909_v26 = vadd.f32 %v706_v25, %v2818_v33  ;;  %v708_v27 = vpop.f32.mrb[23].mxu1 }
 0x284   : > { %v2912_v30 = vadd.f32 %v708_v27, %v2820_v35  ;;  %v761_v31 = vmax.f32 %v2903_v22, %v2906_v24 }
 0x286   : > { %762 = vmax.xlane.f32.xlu0 %v761_v31  ;;  %v764_v32 = vmax.f32 %v2909_v26, %v2912_v30 }
 0x288   : > { %v712_v36 = vpop.f32.mrb[24].mxu1  ;;  %765 = vmax.xlane.f32.xlu1 %v764_v32 }
 0x289   : > { %v2919_v37 = vadd.f32 %v712_v36, %v2818_v33  ;;  %v714_v39 = vpop.f32.mrb[25].mxu1 }
 0x28a   : > { %v2922_v40 = vadd.f32 %v714_v39, %v2820_v35  ;;  %v716_v43 = vpop.f32.mrb[26].mxu1 }
 0x28b   : > { %v2925_v44 = vadd.f32 %v716_v43, %v2818_v33  ;;  %v718_v45 = vpop.f32.mrb[27].mxu1 }
 0x28c   : > { %v2928_v47 = vadd.f32 %v718_v45, %v2820_v35  ;;  %v767_v49 = vmax.f32 %v2919_v37, %v2922_v40 }
 0x28e   : > { %768 = vmax.xlane.f32.xlu0 %v767_v49  ;;  %v770_v50 = vmax.f32 %v2925_v44, %v2928_v47 }
 0x290   : > { %v722_v53 = vpop.f32.mrb[28].mxu1  ;;  %771 = vmax.xlane.f32.xlu1 %v770_v50 }
 0x291   : > { %v2935_v54 = vadd.f32 %v722_v53, %v2818_v33  ;;  %v724_v55 = vpop.f32.mrb[29].mxu1 }
 0x292   : > { %v2938_v57 = vadd.f32 %v724_v55, %v2820_v35  ;;  %v726_v59 = vpop.f32.mrb[30].mxu1 }
 0x293   : > { %v2941_v61 = vadd.f32 %v726_v59, %v2818_v33  ;;  %v728_v63 = vpop.f32.mrb[31].mxu1 }
 0x294   : > { %v2944_v0 = vadd.f32 %v728_v63, %v2820_v35  ;;  %v773_v1 = vmax.f32 %v2935_v54, %v2938_v57 }
 0x296   : > { %774 = vmax.xlane.f32.xlu0 %v773_v1  ;;  %v776_v3 = vmax.f32 %v2941_v61, %v2944_v0 }
 0x298   : > { %777 = vmax.xlane.f32.xlu1 %v776_v3 }
 0x2eb   : > { %v733_v5 = vpop.xlane.xlu0 %732 }
 0x2ec   : > { %v779_v7 = vsub.f32 %v2823_v34, %v733_v5  ;;  %v780_v9 = vsub.f32 %v2826_v38, %v733_v5 }
 0x2ee   : > { %v811_v10 = vmul.f32 1.442695, %v779_v7  ;;  %v813_v33 = vmul.f32 1.442695, %v780_v9 }
 0x2ef   : > { %v736_v11 = vpop.xlane.xlu0 %735 }
 0x2f0   : > { %2188 = vpow2.f32 %v811_v10  ;;  %v781_v35 = vsub.f32 %v2829_v41, %v736_v11  ;;  %v782_v13 = vsub.f32 %v2832_v42, %v736_v11 }
 0x2f1   : > { %2190 = vpow2.f32 %v813_v33 }
 0x2f2   : > { %v815_v15 = vmul.f32 1.442695, %v781_v35  ;;  %v817_v17 = vmul.f32 1.442695, %v782_v13 }
 0x2f3   : > { %v739_v19 = vpop.xlane.xlu1 %738 }
 0x2f4   : > { %2192 = vpow2.f32 %v815_v15  ;;  %v783_v20 = vsub.f32 %v2839_v46, %v739_v19  ;;  %v784_v21 = vsub.f32 %v2842_v48, %v739_v19 }
 0x2f5   : > { %2194 = vpow2.f32 %v817_v17 }
 0x2f6   : > { %v819_v34 = vmul.f32 1.442695, %v783_v20  ;;  %v821_v38 = vmul.f32 1.442695, %v784_v21 }
 0x2f7   : > { %v742_v23 = vpop.xlane.xlu1 %741 }
 0x2f8   : > { %2196 = vpow2.f32 %v819_v34  ;;  %v785_v25 = vsub.f32 %v2845_v51, %v742_v23  ;;  %v786_v41 = vsub.f32 %v2848_v52, %v742_v23 }
 0x2f9   : > { %2198 = vpow2.f32 %v821_v38 }
 0x2fa   : > { %v2189_v42 = vpop.eup %2188  ;;  %v823_v27 = vmul.f32 1.442695, %v785_v25  ;;  %v825_v31 = vmul.f32 1.442695, %v786_v41 }
 0x2fb   : > { %v2191_v32 = vpop.eup %2190  ;;  %v745_v36 = vpop.xlane.xlu0 %744 }
 0x2fc   : > { %2200 = vpow2.f32 %v823_v27  ;;  %v787_v46 = vsub.f32 %v2855_v56, %v745_v36  ;;  %v788_v48 = vsub.f32 %v2858_v58, %v745_v36  ;;  %v875_v39 = vadd.f32 %v2191_v32, %v2189_v42 }
 0x2fd   : > { %2202 = vpow2.f32 %v825_v31  ;;  %v748_v43 = vpop.xlane.xlu1 %747 }
 0x2fe   : > { %v2193_v45 = vpop.eup %2192  ;;  %v827_v49 = vmul.f32 1.442695, %v787_v46  ;;  %v829_v50 = vmul.f32 1.442695, %v788_v48  ;;  %v789_v51 = vsub.f32 %v2861_v60, %v748_v43  ;;  %v790_v52 = vsub.f32 %v2864_v62, %v748_v43  ;;  %876 = vadd.xlane.f32.xlu0 %v875_v39 }
 0x2ff   : > { %v2195_v53 = vpop.eup %2194  ;;  %v2063_v55 = vpack.c.bf16 %v2193_v45, %v2189_v42 }
 0x300   : > { %2204 = vpow2.f32 %v827_v49  ;;  %v831_v59 = vmul.f32 1.442695, %v789_v51  ;;  %v833_v63 = vmul.f32 1.442695, %v790_v52  ;;  %v2061_v1 = vpack.c.bf16 %v2195_v53, %v2191_v32 }
 0x301   : > { %2206 = vpow2.f32 %v829_v50  ;;  %v878_v56 = vadd.f32 %v2195_v53, %v2193_v45 }
 0x302   : > { %v2962_v58 = vpop.eup %2196  ;;  %2208 = vpow2.f32 %v831_v59  ;;  %2062 = vmatprep.subr.bf16.mxu0 %v2061_v1 }
 0x303   : > { %v2199_v3 = vpop.eup %2198  ;;  %2210 = vpow2.f32 %v833_v63  ;;  %879 = vadd.xlane.f32.xlu1 %v878_v56  ;;  %2064 = vmatpush1.bf16.msra.mxu0 %v2063_v55  ;;  %v751_v60 = vpop.xlane.xlu0 %750 }
 0x304   : > { %v791_v62 = vsub.f32 %v2871_v2, %v751_v60  ;;  %v792_v5 = vsub.f32 %v2874_v4, %v751_v60  ;;  %v881_v7 = vadd.f32 %v2199_v3, %v2962_v58 }
 0x305   : > { %v754_v9 = vpop.xlane.xlu1 %753 }
 0x306   : > { %v2967_v10 = vpop.eup %2200  ;;  %v835_v33 = vmul.f32 1.442695, %v791_v62  ;;  %v837_v11 = vmul.f32 1.442695, %v792_v5  ;;  %v793_v35 = vsub.f32 %v2877_v6, %v754_v9  ;;  %v794_v13 = vsub.f32 %v2880_v8, %v754_v9  ;;  %882 = vadd.xlane.f32.xlu0 %v881_v7 }
 0x307   : > { %v2203_v15 = vpop.eup %2202  ;;  %v2067_v17 = vpack.c.bf16 %v2967_v10, %v2962_v58 }
 0x308   : > { %2212 = vpow2.f32 %v835_v33  ;;  %v839_v2 = vmul.f32 1.442695, %v793_v35  ;;  %v841_v19 = vmul.f32 1.442695, %v794_v13  ;;  %v2065_v4 = vpack.c.bf16 %v2203_v15, %v2199_v3 }
 0x309   : > { %2214 = vpow2.f32 %v837_v11  ;;  %v884_v20 = vadd.f32 %v2203_v15, %v2967_v10 }
 0x30a   : > { %v2974_v21 = vpop.eup %2204  ;;  %2216 = vpow2.f32 %v839_v2  ;;  %2066 = vmatprep.subr.bf16.mxu0 %v2065_v4 }
 0x30b   : > { %v2976_v34 = vpop.eup %2206  ;;  %2218 = vpow2.f32 %v841_v19  ;;  %885 = vadd.xlane.f32.xlu1 %v884_v20  ;;  %v757_v6 = vpop.xlane.xlu0 %756 }
 0x30c   : > { %v2978_v8 = vpop.eup %2208  ;;  %v795_v38 = vsub.f32 %v2887_v12, %v757_v6  ;;  %v796_v23 = vsub.f32 %v2890_v14, %v757_v6  ;;  %v887_v25 = vadd.f32 %v2976_v34, %v2974_v21 }
 0x30d   : > { %v2984_v41 = vpop.eup %2210  ;;  %v760_v42 = vpop.xlane.xlu1 %759  ;;  %v2071_v27 = vpack.c.bf16 %v2978_v8, %v2974_v21 }
 0x30e   : > { %v843_v31 = vmul.f32 1.442695, %v795_v38  ;;  %v845_v32 = vmul.f32 1.442695, %v796_v23  ;;  %v797_v36 = vsub.f32 %v2893_v16, %v760_v42  ;;  %v798_v46 = vsub.f32 %v2896_v18, %v760_v42  ;;  %888 = vadd.xlane.f32.xlu0 %v887_v25 }
 0x30f   : > { %v890_v12 = vadd.f32 %v2984_v41, %v2978_v8  ;;  %v2069_v14 = vpack.c.bf16 %v2984_v41, %v2976_v34 }
 0x310   : > { %2220 = vpow2.f32 %v843_v31  ;;  %v847_v48 = vmul.f32 1.442695, %v797_v36  ;;  %v849_v39 = vmul.f32 1.442695, %v798_v46 }
 0x311   : > { %2222 = vpow2.f32 %v845_v32  ;;  %891 = vadd.xlane.f32.xlu1 %v890_v12 }
 0x312   : > { %v2994_v43 = vpop.eup %2212  ;;  %2224 = vpow2.f32 %v847_v48 }
 0x313   : > { %v2996_v45 = vpop.eup %2214  ;;  %2226 = vpow2.f32 %v849_v39  ;;  %v763_v16 = vpop.xlane.xlu0 %762 }
 0x314   : > { %v2998_v18 = vpop.eup %2216  ;;  %v799_v49 = vsub.f32 %v2903_v22, %v763_v16  ;;  %v800_v50 = vsub.f32 %v2906_v24, %v763_v16  ;;  %v893_v51 = vadd.f32 %v2996_v45, %v2994_v43 }
 0x315   : > { %v3004_v52 = vpop.eup %2218  ;;  %v766_v53 = vpop.xlane.xlu1 %765  ;;  %v2075_v55 = vpack.c.bf16 %v2998_v18, %v2994_v43 }
 0x316   : > { %v851_v59 = vmul.f32 1.442695, %v799_v49  ;;  %v853_v63 = vmul.f32 1.442695, %v800_v50  ;;  %v801_v1 = vsub.f32 %v2909_v26, %v766_v53  ;;  %v802_v56 = vsub.f32 %v2912_v30, %v766_v53  ;;  %894 = vadd.xlane.f32.xlu0 %v893_v51 }
 0x317   : > { %v896_v22 = vadd.f32 %v3004_v52, %v2998_v18  ;;  %v2073_v24 = vpack.c.bf16 %v3004_v52, %v2996_v45 }
 0x318   : > { %2228 = vpow2.f32 %v851_v59  ;;  %v855_v3 = vmul.f32 1.442695, %v801_v1  ;;  %v857_v60 = vmul.f32 1.442695, %v802_v56 }
 0x319   : > { %2230 = vpow2.f32 %v853_v63  ;;  %897 = vadd.xlane.f32.xlu1 %v896_v22 }
 0x31a   : > { %v3014_v62 = vpop.eup %2220  ;;  %2232 = vpow2.f32 %v855_v3 }
 0x31b   : > { %v3016_v5 = vpop.eup %2222  ;;  %2234 = vpow2.f32 %v857_v60  ;;  %v769_v26 = vpop.xlane.xlu0 %768 }
 0x31c   : > { %v3018_v30 = vpop.eup %2224  ;;  %v803_v7 = vsub.f32 %v2919_v37, %v769_v26  ;;  %v804_v9 = vsub.f32 %v2922_v40, %v769_v26  ;;  %v899_v33 = vadd.f32 %v3016_v5, %v3014_v62 }
 0x31d   : > { %v3024_v11 = vpop.eup %2226  ;;  %v772_v35 = vpop.xlane.xlu1 %771  ;;  %v3299_v34 = vpack.c.bf16 %v3018_v30, %v3014_v62 }
 0x31e   : > { %v859_v15 = vmul.f32 1.442695, %v803_v7  ;;  %v861_v2 = vmul.f32 1.442695, %v804_v9  ;;  %v805_v19 = vsub.f32 %v2925_v44, %v772_v35  ;;  %v806_v4 = vsub.f32 %v2928_v47, %v772_v35  ;;  %900 = vadd.xlane.f32.xlu0 %v899_v33 }
 0x31f   : > { %v902_v37 = vadd.f32 %v3024_v11, %v3018_v30  ;;  %v2077_v40 = vpack.c.bf16 %v3024_v11, %v3016_v5 }
 0x320   : > { %2236 = vpow2.f32 %v859_v15  ;;  %v863_v20 = vmul.f32 1.442695, %v805_v19  ;;  %v865_v6 = vmul.f32 1.442695, %v806_v4  ;;  %v2489_v15 = vmov 0.0  }
 0x321   : > { %2238 = vpow2.f32 %v861_v2  ;;  %903 = vadd.xlane.f32.xlu1 %v902_v37  ;;  %1165 = vmatprep.mubr.f32.mxu0 %v2489_v15 }
 0x322   : > { %v3034_v38 = vpop.eup %2228  ;;  %2240 = vpow2.f32 %v863_v20 }
 0x323   : > { %v3036_v23 = vpop.eup %2230  ;;  %2242 = vpow2.f32 %v865_v6  ;;  %v775_v44 = vpop.xlane.xlu0 %774 }
 0x324   : > { %v3038_v47 = vpop.eup %2232  ;;  %v807_v25 = vsub.f32 %v2935_v54, %v775_v44  ;;  %v808_v42 = vsub.f32 %v2938_v57, %v775_v44  ;;  %v905_v31 = vadd.f32 %v3036_v23, %v3034_v38 }
 0x325   : > { %v3044_v32 = vpop.eup %2234  ;;  %v778_v36 = vpop.xlane.xlu1 %777 }
 0x326   : > { %v867_v12 = vmul.f32 1.442695, %v807_v25  ;;  %v869_v48 = vmul.f32 1.442695, %v808_v42  ;;  %v809_v39 = vsub.f32 %v2941_v61, %v778_v36  ;;  %v810_v16 = vsub.f32 %v2944_v0, %v778_v36  ;;  %906 = vadd.xlane.f32.xlu0 %v905_v31 }
 0x327   : > { %v908_v54 = vadd.f32 %v3044_v32, %v3038_v47  ;;  %v3300_v8 = vpack.c.bf16 %v3044_v32, %v3036_v23  ;;  %v3306_v23 = vlaneseq }
 0x328   : > { %2244 = vpow2.f32 %v867_v12  ;;  %v871_v49 = vmul.f32 1.442695, %v809_v39  ;;  %v873_v50 = vmul.f32 1.442695, %v810_v16 }
 0x329   : > { %2246 = vpow2.f32 %v869_v48  ;;  %909 = vadd.xlane.f32.xlu1 %v908_v54  ;;  %vm3166_vm11 = vcmp.lt.s32.totalorder %v3306_v23, 256 }
 0x32a   : > { %v3054_v51 = vpop.eup %2236  ;;  %2248 = vpow2.f32 %v871_v49  ;;  %v957_v49 = vand.u32 127, %v3275_v28 }
 0x32b   : > { %v3056_v53 = vpop.eup %2238  ;;  %2250 = vpow2.f32 %v873_v50 }
 0x32c   : > { %v3058_v61 = vpop.eup %2240  ;;  %v911_v0 = vadd.f32 %v3056_v53, %v3054_v51 }
 0x32d   : > { %v3062_v59 = vpop.eup %2242  ;;  %v3303_v18 = vpack.c.bf16 %v3058_v61, %v3054_v51 }
 0x32e   : > { %912 = vadd.xlane.f32.xlu0 %v911_v0  ;;  %v914_v1 = vadd.f32 %v3062_v59, %v3058_v61  ;;  %v3302_v43 = vpack.c.bf16 %v3062_v59, %v3056_v53 }
 0x330   : > { %915 = vadd.xlane.f32.xlu1 %v914_v1  ;;  %v962_v1 = vadd.s32 4294967288, %v957_v49 }
 0x332   : > { %v3070_v22 = vpop.eup %2244 }
 0x333   : > { %v3072_v3 = vpop.eup %2246 }
 0x334   : > { %v3074_v60 = vpop.eup %2248  ;;  %v917_v26 = vadd.f32 %v3072_v3, %v3070_v22 }
 0x335   : > { %v3078_v7 = vpop.eup %2250 }
 0x336   : > { %918 = vadd.xlane.f32.xlu0 %v917_v26  ;;  %v920_v33 = vadd.f32 %v3078_v7, %v3074_v60  ;;  %v3304_v52 = vpack.c.bf16 %v3078_v7, %v3072_v3 }
 0x338   : > { %921 = vadd.xlane.f32.xlu1 %v920_v33 }
 0x38b   : > { %v877_v19 = vpop.xlane.xlu0 %876 }
 0x38c   : > { %2252 = vrcp.f32 %v877_v19 }
 0x390   : > { %v880_v2 = vpop.xlane.xlu1 %879 }
 0x391   : > { %2254 = vrcp.f32 %v880_v2 }
 0x393   : > { %v883_v37 = vpop.xlane.xlu0 %882 }
 0x394   : > { %2256 = vrcp.f32 %v883_v37  ;;  %v965_v37 = vsub.s32 %v962_v1, %v2811_v29 }
 0x396   : > { %v2253_v39 = vpop.eup %2252 }
 0x398   : > { %v886_v4 = vpop.xlane.xlu1 %885 }
 0x399   : > { %2258 = vrcp.f32 %v886_v4 }
 0x39b   : > { %v889_v6 = vpop.xlane.xlu0 %888  ;;  %v2255_v54 = vpop.eup %2254 }
 0x39c   : > { %2260 = vrcp.f32 %v889_v6  ;;  %v966_v28 = vrot.slane %v2255_v54, %v965_v37 }
 0x39e   : > { %v892_v20 = vpop.xlane.xlu1 %891  ;;  %v2257_v50 = vpop.eup %2256 }
 0x39f   : > { %2262 = vrcp.f32 %v892_v20 }
 0x3a3   : > { %v895_v25 = vpop.xlane.xlu0 %894  ;;  %v2259_v0 = vpop.eup %2258 }
 0x3a4   : > { %2264 = vrcp.f32 %v895_v25  ;;  %v960_v25 = vsub.s32 %v957_v49, %v2811_v29 }
 0x3a6   : > { %v898_v44 = vpop.xlane.xlu1 %897  ;;  %v2261_v26 = vpop.eup %2260  ;;  %v972_v9 = vrot.slane %v2257_v50, %v960_v25  ;;  %v961_v46 = vrot.slane %v2253_v39, %v960_v25 }
 0x3a7   : > { %2266 = vrcp.f32 %v898_v44 }
 0x3a8   : > { %v968_v54 = vsel %vm967_vm2, %v966_v28, %v961_v46 }
 0x3a9   : > { %v2263_v33 = vpop.eup %2262 }
 0x3ab   : > { %v901_v31 = vpop.xlane.xlu0 %900 }
 0x3ac   : > { %2268 = vrcp.f32 %v901_v31 }
 0x3ae   : > { %v904_v42 = vpop.xlane.xlu1 %903  ;;  %v2265_v19 = vpop.eup %2264 }
 0x3af   : > { %2270 = vrcp.f32 %v904_v42  ;;  %v976_v42 = vrot.slane %v2259_v0, %v965_v37  ;;  %v990_v57 = vrot.slane %v2265_v19, %v960_v25 }
 0x3b1   : > { %v2267_v4 = vpop.eup %2266 }
 0x3b2   : > { %v994_v35 = vrot.slane %v2267_v4, %v965_v37 }
 0x3b3   : > { %v907_v12 = vpop.xlane.xlu0 %906 }
 0x3b4   : > { %v995_v50 = vsel %vm967_vm2, %v994_v35, %v990_v57 }
 0x3b6   : > { %v910_v36 = vpop.xlane.xlu1 %909  ;;  %v2269_v6 = vpop.eup %2268 }
 0x3b7   : > { %2272 = vrcp.f32 %v910_v36  ;;  %v985_v36 = vrot.slane %v2263_v33, %v965_v37  ;;  %v999_v33 = vrot.slane %v2269_v6, %v960_v25 }
 0x3b9   : > { %v2271_v44 = vpop.eup %2270 }
 0x3ba   : > { %v1003_v1 = vrot.slane %v2271_v44, %v965_v37 }
 0x3bb   : > { %v913_v16 = vpop.xlane.xlu0 %912 }
 0x3bd   : > { %v916_v48 = vpop.xlane.xlu1 %915 }
 0x3be   : > { %2274 = vrcp.f32 %v916_v48  ;;  %v2490_v48 = vmov 1966171168  }
 0x3bf   : > { %2276 = vrcp.f32 %v907_v12 }
 0x3c0   : > { %2278 = vrcp.f32 %v913_v16  ;;  %v1051_v16 = vunpack.c.l.s4 %v2490_v48 }
 0x3c1   : > { %v2273_v31 = vpop.eup %2272 }
 0x3c2   : > { %v1012_v49 = vrot.slane %v2273_v31, %v965_v37  ;;  %v1052_v19 = vunpack.c.0.s8 %v1051_v16 }
 0x3c3   : > { %v919_v2 = vpop.xlane.xlu0 %918 }
 0x3c4   : > { %2280 = vrcp.f32 %v919_v2  ;;  %v981_v2 = vrot.slane %v2261_v26, %v960_v25 }
 0x3c5   : > { %v922_v20 = vpop.xlane.xlu1 %921 }
 0x3c6   : > { %2282 = vrcp.f32 %v922_v20  ;;  %v977_v20 = vsel %vm967_vm2, %v976_v42, %v972_v9  ;;  %v986_v0 = vsel %vm967_vm2, %v985_v36, %v981_v2  ;;  %v1004_v9 = vsel %vm967_vm2, %v1003_v1, %v999_v33  ;;  %v923_v36 = vld [vmem:[%s2753_s20] sm:$0xff] }
 0x3c7   : > { %v1033_v26 = vsel %vm1032_vm3, %v977_v20, %v968_v54 }
 0x3c8   : > { %v2275_v12 = vpop.eup %2274  ;;  %v1035_v44 = vsel %vm1034_vm4, %v986_v0, %v1033_v26 }
 0x3c9   : > { %v2277_v63 = vpop.eup %2276  ;;  %v1021_v13 = vrot.slane %v2275_v12, %v965_v37  ;;  %v1037_v31 = vsel %vm1036_vm5, %v995_v50, %v1035_v44  ;;  %v3100_v12 = vsub.s32 %v1052_v19, %v2811_v29 }
 0x3ca   : > { %v2279_v56 = vpop.eup %2278  ;;  %v1008_v4 = vrot.slane %v2277_v63, %v960_v25  ;;  %v1039_v46 = vsel %vm1038_vm6, %v1004_v9, %v1037_v31 }
 0x3cb   : > { %v1017_v39 = vrot.slane %v2279_v56, %v960_v25 }
 0x3cc   : > { %v1013_v6 = vsel %vm967_vm2, %v1012_v49, %v1008_v4 }
 0x3cd   : > { %v1022_v28 = vsel %vm967_vm2, %v1021_v13, %v1017_v39  ;;  %v1041_v35 = vsel %vm1040_vm7, %v1013_v6, %v1039_v46 }
 0x3ce   : > { %v2281_v48 = vpop.eup %2280  ;;  %v1043_v56 = vsel %vm1042_vm8, %v1022_v28, %v1041_v35 }
 0x3cf   : > { %v1026_v57 = vrot.slane %v2281_v48, %v960_v25 }
 0x3d0   : > { %v2283_v42 = vpop.eup %2282 }
 0x3d1   : > { %v1030_v63 = vrot.slane %v2283_v42, %v965_v37 }
 0x3d3   : > { %v1031_v16 = vsel %vm967_vm2, %v1030_v63, %v1026_v57 }
 0x3d4   : > { %v1045_v2 = vsel %vm1044_vm9, %v1031_v16, %v1043_v56 }
 0x3d5   : > { %v1047_v1 = vmul.f32 %v1045_v2, %v923_v36 }
 0x3d7   : > { %v1056_v20 = vrot.slane %v1047_v1, %v3100_v12  ;;  %v1049_v10 = vcombine.high %v1047_v1, %v1047_v1 }
 0x3d9   : > { %v1072_v49 = vrot.slane %v1056_v20, %v3100_v12  ;;  %v1064_v13 = vcombine.high %v1056_v20, %v1056_v20  ;;  %v1063_v21 = vrot.slane %v1049_v10, %v3100_v12 }
 0x3db   : > { %2013 = vmatmul.mubr.msk.f32.vlgmr.msra.gmra.mrb[16].mxu0 %vm1098_vm10, %v1072_v49  ;;  %v1086_v29 = vrot.slane %v1064_v13, %v3100_v12  ;;  %v1094_v58 = vcombine.high %v1072_v49, %v1072_v49  ;;  %v1079_v41 = vrot.slane %v1063_v21, %v3100_v12 }
 0x3dc   : > { %2068 = vmatpush1.bf16.msra.mxu0 %v2067_v17  ;;  %1238 = vmatprep.mubr.f32.mxu0 %v2489_v15 }
 0x3dd   : > { %2070 = vmatprep.subr.bf16.mxu0 %v2069_v14  ;;  %v1096_v17 = vcombine.high %v1086_v29, %v1086_v29  ;;  %v3301_v14 = vpack.c.bf16 %v3038_v47, %v3034_v38 }
 0x3df   : > { %2014 = vmatmul.mubr.msk.f32.vlgmr.msra.gmra.mrb[18].mxu0 %vm1098_vm10, %v1086_v29 }
 0x3e0   : > { %2072 = vmatpush1.bf16.msra.mxu0 %v2071_v27  ;;  %1311 = vmatprep.mubr.f32.mxu0 %v2489_v15  ;;  %v1065_v27 = vcombine.high %v1063_v21, %v1063_v21 }
 0x3e1   : > { %2074 = vmatprep.subr.bf16.mxu0 %v2073_v24  ;;  %v3305_v24 = vpack.c.bf16 %v3074_v60, %v3070_v22 }
 0x3e2   : > { %v1093_v45 = vrot.slane %v1065_v27, %v3100_v12 }
 0x3e3   : > { %2015 = vmatmul.mubr.msk.f32.vlgmr.msra.gmra.mrb[20].mxu0 %vm1098_vm10, %v1094_v58 }
 0x3e4   : > { %2076 = vmatpush1.bf16.msra.mxu0 %v2075_v55  ;;  %1384 = vmatprep.mubr.f32.mxu0 %v2489_v15  ;;  %v1095_v55 = vcombine.high %v1079_v41, %v1079_v41  ;;  %v1097_v62 = vcombine.high %v1093_v45, %v1093_v45 }
 0x3e5   : > { %2078 = vmatprep.subr.bf16.mxu0 %v2077_v40 }
 0x3e7   : > { %2016 = vmatmul.mubr.msk.f32.vlgmr.msra.gmra.mrb[22].mxu0 %vm1098_vm10, %v1096_v17 }
 0x3e8   : > { %2080 = vmatpush1.bf16.msra.mxu0 %v3299_v34  ;;  %1457 = vmatprep.mubr.f32.mxu0 %v2489_v15 }
 0x3e9   : > { %2082 = vmatprep.subr.bf16.mxu0 %v3300_v8 }
 0x3eb   : > { %2017 = vmatmul.mubr.msk.f32.vlgmr.msra.gmra.mrb[24].mxu0 %vm1098_vm10, %v1079_v41 }
 0x3ec   : > { %2084 = vmatpush1.bf16.msra.mxu0 %v3301_v14  ;;  %1530 = vmatprep.mubr.f32.mxu0 %v2489_v15 }
 0x3ed   : > { %2086 = vmatprep.subr.bf16.mxu0 %v3302_v43 }
 0x3ef   : > { %2018 = vmatmul.mubr.msk.f32.vlgmr.msra.gmra.mrb[26].mxu0 %vm1098_vm10, %v1093_v45 }
 0x3f0   : > { %2088 = vmatpush1.bf16.msra.mxu0 %v3303_v18  ;;  %1603 = vmatprep.mubr.f32.mxu0 %v2489_v15 }
 0x3f1   : > { %2090 = vmatprep.subr.bf16.mxu0 %v3304_v52 }
 0x3f3   : > { %2019 = vmatmul.mubr.msk.f32.vlgmr.msra.gmra.mrb[28].mxu0 %vm1098_vm10, %v1095_v55 }
 0x3f4   : > { %2092 = vmatpush1.bf16.msra.mxu0 %v3305_v24  ;;  %1676 = vmatprep.mubr.f32.mxu0 %v2489_v15 }
 0x3f7   : > { %2020 = vmatmul.mubr.msk.f32.vlgmr.msra.gmra.mrb[30].mxu0 %vm1098_vm10, %v1097_v62 }
 0x4ae   : > { %v1167_v5 = vpop.f32.mrb[16].mxu0 }
 0x4af   : > { %v1169_v30 = vpop.f32.mrb[17].mxu0 }
 0x4b0   : > { %v1699_v11 = vcombine.low %v1167_v5, %v1169_v30 }
 0x4b2   : > { %v1706_v40 = vrot.slane %v1699_v11, %v3100_v12  ;;  %v1240_v38 = vpop.f32.mrb[18].mxu0 }
 0x4b3   : > { %v1242_v32 = vpop.f32.mrb[19].mxu0 }
 0x4b4   : > { %v1713_v51 = vrot.slane %v1706_v40, %v3100_v12  ;;  %v1714_v53 = vcombine.low %v1240_v38, %v1242_v32 }
 0x4b6   : > { %1831 = vst.msk [vmem:[%s3171_s12] sm:$0x3] %vm3166_vm11, %v1713_v51  ;;  %v1721_v61 = vrot.slane %v1714_v53, %v3100_v12  ;;  %v1313_v59 = vpop.f32.mrb[20].mxu0 }
 0x4b7   : > { %v1315_v22 = vpop.f32.mrb[21].mxu0 }
 0x4b8   : > { %v1728_v3 = vrot.slane %v1721_v61, %v3100_v12  ;;  %v1729_v60 = vcombine.low %v1313_v59, %v1315_v22 }
 0x4ba   : > { %1832 = vst.msk [vmem:[%s3171_s12 + $0x2] sm:$0x3] %vm3166_vm11, %v1728_v3  ;;  %v1736_v7 = vrot.slane %v1729_v60, %v3100_v12  ;;  %v1386_v15 = vpop.f32.mrb[22].mxu0 }
 0x4bb   : > { %v1388_v37 = vpop.f32.mrb[23].mxu0 }
 0x4bc   : > { %v1743_v25 = vrot.slane %v1736_v7, %v3100_v12  ;;  %v1744_v0 = vcombine.low %v1386_v15, %v1388_v37 }
 0x4be   : > { %1833 = vst.msk [vmem:[%s3171_s12 + $0x4] sm:$0x3] %vm3166_vm11, %v1743_v25  ;;  %v1751_v33 = vrot.slane %v1744_v0, %v3100_v12  ;;  %v1459_v54 = vpop.f32.mrb[24].mxu0 }
 0x4bf   : > { %v1461_v50 = vpop.f32.mrb[25].mxu0 }
 0x4c0   : > { %v1758_v4 = vrot.slane %v1751_v33, %v3100_v12  ;;  %v1759_v48 = vcombine.low %v1459_v54, %v1461_v50 }
 0x4c2   : > { %1834 = vst.msk [vmem:[%s3171_s12 + $0x6] sm:$0x3] %vm3166_vm11, %v1758_v4  ;;  %v1766_v26 = vrot.slane %v1759_v48, %v3100_v12  ;;  %v1532_v9 = vpop.f32.mrb[26].mxu0 }
 0x4c3   : > { %v1534_v39 = vpop.f32.mrb[27].mxu0 }
 0x4c4   : > { %v1773_v19 = vrot.slane %v1766_v26, %v3100_v12  ;;  %v1774_v44 = vcombine.low %v1532_v9, %v1534_v39 }
 0x4c6   : > { %1835 = vst.msk [vmem:[%s3171_s12 + $0x8] sm:$0x3] %vm3166_vm11, %v1773_v19  ;;  %v1781_v6 = vrot.slane %v1774_v44, %v3100_v12  ;;  %v1605_v42 = vpop.f32.mrb[28].mxu0 }
 0x4c7   : > { %v1607_v31 = vpop.f32.mrb[29].mxu0 }
 0x4c8   : > { %v1788_v28 = vrot.slane %v1781_v6, %v3100_v12  ;;  %v1789_v46 = vcombine.low %v1605_v42, %v1607_v31 }
 0x4ca   : > { %1836 = vst.msk [vmem:[%s3171_s12 + $0xa] sm:$0x3] %vm3166_vm11, %v1788_v28  ;;  %v1796_v57 = vrot.slane %v1789_v46, %v3100_v12  ;;  %v1678_v63 = vpop.f32.mrb[30].mxu0 }
 0x4cb   : > { %v1680_v35 = vpop.f32.mrb[31].mxu0 }
 0x4cc   : > { %v1803_v36 = vrot.slane %v1796_v57, %v3100_v12  ;;  %v1804_v56 = vcombine.low %v1678_v63, %v1680_v35 }
 0x4ce   : > { %1837 = vst.msk [vmem:[%s3171_s12 + $0xc] sm:$0x3] %vm3166_vm11, %v1803_v36  ;;  %v1811_v16 = vrot.slane %v1804_v56, %v3100_v12 }
 0x4d0   : > { %v1818_v2 = vrot.slane %v1811_v16, %v3100_v12 }
 0x4d2   : > { %1838 = vst.msk [vmem:[%s3171_s12 + $0xe] sm:$0x3] %vm3166_vm11, %v1818_v2 }
 0x4d3   : > { %2413 = shalt.err (!%p2410_p5)
}
 0x4d4   : > { %s2414_s4 = scalar_lea.hbm %s3212_s7, 256  ;;  %s2418_s27 = scalar_lea.hbm %s3268_s6, 512 }
 0x4d5   : > { %p2415_p1 = scmp.ne.s32.totalorder %s3212_s7, %s2414_s4  ;;  %p2419_p0 = scmp.lt.u32.totalorder %s3212_s7, %s3268_s6 }
 0x4d6   : > { %p2420_p9 = scmp.lt.u32.totalorder %s2418_s27, %s2414_s4  ;;  %p2422_p2 = scmp.lt.u32.totalorder %s2414_s4, %s3212_s7 }
 0x4d7   : > { %p2416_p8 = pnand %p2415_p1, %p3309_p13 }
 0x4d8   : > { %p2421_p12 = por %p2420_p9, %p2419_p0 }
 0x4d9   : > { %p2417_p11 = pneg %p2416_p8 }
 0x4da   : > { %p2423_p6 = por %p2422_p2, %p2421_p12 }
 0x4dc   : > { %p2424_p10 = pnand %p2423_p6, %p2417_p11 }
 0x4de   : > { %2427 = shalt.err (!%p2424_p10)
}
 0x4df   : > { %s2492_s16 = smov 32   ;;  %s2493_s19 = smov 2  }
 0x4e0   : > { %2105 = dma.vmem_to_hbm [thread:$0]  (%p3309_p13), %s3214_s2, 256, %s3212_s7, %s1840_s25, %s2492_s16, %s2492_s16, %s2493_s19  }
 0x4e1 PF: > { %s1869_s12 = sand.u32 1, %s2466_s21   ;;  %p3310_p4 = scmp.ne.s32.totalorder %s3280_s28, 0 }
 0x4e2   : > { %p3311_p7 = scmp.ge.s32.totalorder %s2478_s24, 2  ;;  %s1870_s14 = scalar_lea.sflag [#allocation4], %s1869_s12 }
 0x4e4   : > { %p2122_p3 = pnand %p3311_p7, %p3310_p4 }
 0x4e6   : > { %2461 = dma.done.wait (!%p2122_p3), %s1870_s14, 256  }
 0x4e7   : > { %2463 = vsyncadd (!%p2122_p3), %s1870_s14, 4294967040  ;;  %s3312_s9 = sld [smem:[#allocation16_spill]]  ;;  %p23_p5 = scmp.ge.s32.totalorder %s2642_s26, 4  }
 0x4e8   : > { %s3313_s21 = smov %s2470_s22  ;;  %s3314_s22 = smov %s2474_s23 }
 0x4e9   : > { %s3316_s24 = smov %s2642_s26  ;;  %25 = sbr.rel (!%p23_p5) target bundleno = 12 (0xc), region = 110 }
 0x4ed   : > { %s3315_s23 = smov %s3312_s9 }
 0x4f0   :  { %1875 = vsyncpa [#allocation3], 1 }
 0x4f1   :  { %1877 = vsyncpa [#allocation3 + $0x1], 1 }
 0x4f2   :  { %1878 = vsyncpa [#allocation6], 1 }
 0x4f3   :  { %1880 = vsyncpa [#allocation6 + $0x1], 1 }
 0x4f4   :  { %1881 = vsyncpa [#allocation9], 1 }
 0x4f5   :  { %1882 = vsyncpa [#allocation4], 1 }
 0x4f6   :  { %1884 = vsyncpa [#allocation4 + $0x1], 1 }

</bundles_post_ra>
